<compile_context>
chip_gen: v6e
topology: v6e:2x2x1
jax: 0.10.0
libtpu: 0.0.40
codegen_flags: <defaults>
</compile_context>

<pallas_src>
import jax
import jax.numpy as jnp
from jax.experimental import pallas as pl
from jax.experimental.pallas import tpu as pltpu

LANE = 128


def _outconv_kernel(w_ref, x_ref, o_ref):
    # w_ref: (Cout, Cin)   x_ref: (Bblk, Cin, tn)   o_ref: (Bblk, Cout, tn)
    w = w_ref[...]
    for b in range(x_ref.shape[0]):  # Bblk is small & static -> unrolled
        o_ref[b] = jnp.dot(
            w, x_ref[b], preferred_element_type=jnp.float32
        ).astype(o_ref.dtype)


def _vmem_capacity_bytes():
    """Per-generation VMEM capacity; conservative fallback = v7x (64 MiB/TC)."""
    try:
        info = pltpu.get_tpu_info()
        cap = getattr(info, "vmem_capacity_bytes", None)
        if cap:
            return int(cap)
    except Exception:
        pass
    return 64 << 20


def _pick_spatial_tile(hw, max_cols):
    """Largest divisor of hw that is a multiple of LANE and <= max_cols.

    Only called when hw % LANE == 0, so a solution always exists (tn = 128).
    """
    limit = min(hw, max_cols)
    for n in range(1, hw // LANE + 1):
        if hw % n == 0:
            tn = hw // n
            if tn % LANE == 0 and tn <= limit:
                return tn
    return LANE


def _pick_batch_block(batch, tn, per_elem, max_cols, target_bytes=1 << 20):
    """Smallest divisor of `batch` whose step payload reaches ~1 MiB (VMEM-capped)."""
    bblk = 1
    for d in range(1, batch + 1):
        if batch % d != 0:
            continue
        if d * tn > max_cols:
            break
        bblk = d
        if d * tn * per_elem >= target_bytes:
            break
    return bblk


def out_conv(x_nchw, weight_oi11):
    """1x1 conv, no bias.  x_nchw: (B, Cin, H, W), weight: (Cout, Cin, 1, 1)."""
    B, Cin, H, W = x_nchw.shape
    Cout = weight_oi11.shape[0]
    HW = H * W
    itemsize = jnp.dtype(x_nchw.dtype).itemsize

    x3d = x_nchw.reshape(B, Cin, HW)      # free: contiguous, no data movement
    w2d = weight_oi11.reshape(Cout, Cin)  # free
    w_bytes = Cout * Cin * jnp.dtype(weight_oi11.dtype).itemsize

    # ------------------------------------------------------------------ tiling
    # Per-generation VMEM budget for the double-buffered working set.
    vmem_cap = _vmem_capacity_bytes()
    working_budget = min(int(vmem_cap * 0.6), 96 << 20)
    per_elem = (Cin + Cout) * itemsize  # bytes moved per spatial col per batch
    max_cols = max((working_budget - 2 * w_bytes) // (2 * per_elem), LANE)

    if HW % LANE == 0:
        # Lane-dense tile that divides HW exactly -> no pad, no tail slice.
        tn = _pick_spatial_tile(HW, max_cols)
        hw_pad = HW
    elif HW <= max_cols:
        # Full-extent spatial block (legal even if not 128-aligned).  Tail
        # stores are masked, but that beats an extra HBM pad+slice pass.
        tn = HW
        hw_pad = HW
    else:
        # Rare: huge, non-128-multiple HW.  Pad once to a 128-multiple tile.
        tn = max(LANE, (max_cols // LANE) * LANE)
        hw_pad = pl.cdiv(HW, tn) * tn
        x3d = jnp.pad(x3d, ((0, 0), (0, 0), (0, hw_pad - HW)))

    bblk = _pick_batch_block(B, tn, per_elem, max_cols)
    nb = B // bblk
    n_tiles = hw_pad // tn

    # v7x megacore: make sure the parallel grid has >=2 points when possible.
    if nb * n_tiles < 2:
        if n_tiles == 1 and tn % (2 * LANE) == 0:
            tn //= 2
            n_tiles = hw_pad // tn
        elif nb == 1 and B > 1:
            for d in range(B // 2, 0, -1):
                if B % d == 0:
                    bblk = d
                    break
            nb = B // bblk

    # --------------------------------------------------------------- vmem/cost
    # Double-buffered x+out tiles + (two) weight buffers + fudge.
    # TODO(synk): pipeline_mode=pl.Buffered(1) on the weight spec would drop the
    # second weight buffer; skipped to keep compile risk at zero (it is tiny).
    vmem_need = 2 * bblk * tn * per_elem + 2 * w_bytes + (2 << 20)
    vmem_limit = (
        int(min(vmem_need, int(vmem_cap * 0.75)))
        if vmem_need > (16 << 20)
        else None
    )

    cost = pl.CostEstimate(
        flops=2 * B * Cout * Cin * HW,
        transcendentals=0,
        bytes_accessed=itemsize * B * HW * (Cin + Cout) + w_bytes,
    )

    # ------------------------------------------------------------- pallas call
    y3d = pl.pallas_call(
        _outconv_kernel,
        out_shape=jax.ShapeDtypeStruct((B, Cout, hw_pad), x_nchw.dtype),
        grid_spec=pltpu.PrefetchScalarGridSpec(
            num_scalar_prefetch=0,
            grid=(nb, n_tiles),
            in_specs=[
                # weight: constant block index -> single DMA, stays resident.
                pl.BlockSpec((Cout, Cin), lambda b, i: (0, 0)),
                # x: batch block x full Cin (sublanes) x spatial tile (lanes).
                pl.BlockSpec((bblk, Cin, tn), lambda b, i: (b, 0, i)),
            ],
            out_specs=pl.BlockSpec((bblk, Cout, tn), lambda b, i: (b, 0, i)),
        ),
        compiler_params=pltpu.CompilerParams(
            dimension_semantics=("parallel", "parallel"),
            vmem_limit_bytes=vmem_limit,
        ),
        cost_estimate=cost,
    )(w2d, x3d)

    if hw_pad != HW:
        y3d = y3d[:, :, :HW]
    return y3d.reshape(B, Cout, H, W)


if __name__ == "__main__":
    B, Cin, Cout, H, W = 2, 4, 4, 16, 16

    key = jax.random.PRNGKey(0)
    kx, kw = jax.random.split(key)

    x = jax.random.normal(kx, (B, Cin, H, W), dtype=jnp.float32)
    # nn.Conv2d(Cin, Cout, kernel_size=1, bias=False) weight:
    # shape (Cout, Cin, 1, 1), kaiming-uniform-ish with bound 1/sqrt(Cin).
    bound = 1.0 / jnp.sqrt(jnp.float32(Cin))
    weight = jax.random.uniform(
        kw, (Cout, Cin, 1, 1), dtype=jnp.float32, minval=-bound, maxval=bound
    )

    y = out_conv(x, weight)
    y = jax.block_until_ready(y)

    # Reference: 1x1 conv == per-pixel channel matmul.
    y_ref = jnp.einsum("bchw,oc->bohw", x, weight.reshape(Cout, Cin))
    assert y.shape == (B, Cout, H, W)
    assert jnp.allclose(y, y_ref, atol=1e-5, rtol=1e-5)

    print("KERNEL_OK")
</pallas_src>

<mosaic_0001>
module attributes {stable_mosaic.version = 11 : i64} {
  func.func @_outconv_kernel(%arg0: i32, %arg1: i32, %arg2: memref<4x4xf32, #tpu.memory_space<vmem>>, %arg3: memref<2x4x128xf32, #tpu.memory_space<vmem>>, %arg4: memref<2x4x128xf32, #tpu.memory_space<vmem>>) attributes {dimension_semantics = [#tpu.dimension_semantics<parallel>, #tpu.dimension_semantics<parallel>], iteration_bounds = array<i64: 1, 2>, scalar_prefetch = 0 : i64, scratch_operands = 0 : i64, tpu.core_type = #tpu.core_type<tc>, window_params = [{pipeline_mode = #tpu.pipeline_mode<synchronous>, transform_indices = @transform_0, window_bounds = array<i64: 4, 4>}, {transform_indices = @transform_1, window_bounds = array<i64: 2, 4, 128>}, {transform_indices = @transform_2, window_bounds = array<i64: 2, 4, 128>}]} {
    %c0 = arith.constant 0 : index
    %c0_0 = arith.constant 0 : index
    %0 = vector.load %arg2[%c0, %c0_0] : memref<4x4xf32, #tpu.memory_space<vmem>>, vector<4x4xf32>
    %c0_1 = arith.constant 0 : index
    %c0_2 = arith.constant 0 : index
    %c0_3 = arith.constant 0 : index
    %1 = vector.load %arg3[%c0_1, %c0_2, %c0_3] : memref<2x4x128xf32, #tpu.memory_space<vmem>>, vector<1x4x128xf32>
    %2 = vector.shape_cast %1 : vector<1x4x128xf32> to vector<4x128xf32>
    %cst = arith.constant dense<0.000000e+00> : vector<4x128xf32>
    %3 = tpu.matmul %0, %2, %cst {dimension_numbers = #tpu.dot_dimension_numbers<[1], [0], [0], [1], [0, 0, 1, 1], [], []>} : vector<4x4xf32>, vector<4x128xf32>, vector<4x128xf32> -> vector<4x128xf32>
    %c0_4 = arith.constant 0 : index
    %c0_5 = arith.constant 0 : index
    %c0_6 = arith.constant 0 : index
    %4 = vector.load %arg4[%c0_4, %c0_5, %c0_6] : memref<2x4x128xf32, #tpu.memory_space<vmem>>, vector<1x4x128xf32>
    %5 = vector.shape_cast %4 : vector<1x4x128xf32> to vector<4x128xf32>
    %6 = vector.shape_cast %3 : vector<4x128xf32> to vector<1x4x128xf32>
    tpu.vector_store %arg4[%c0_4, %c0_5, %c0_6], %6 {strides = array<i32>} : memref<2x4x128xf32, #tpu.memory_space<vmem>>, vector<1x4x128xf32>,
    %c1 = arith.constant 1 : index
    %c0_7 = arith.constant 0 : index
    %c0_8 = arith.constant 0 : index
    %7 = vector.load %arg3[%c1, %c0_7, %c0_8] : memref<2x4x128xf32, #tpu.memory_space<vmem>>, vector<1x4x128xf32>
    %8 = vector.shape_cast %7 : vector<1x4x128xf32> to vector<4x128xf32>
    %cst_9 = arith.constant dense<0.000000e+00> : vector<4x128xf32>
    %9 = tpu.matmul %0, %8, %cst_9 {dimension_numbers = #tpu.dot_dimension_numbers<[1], [0], [0], [1], [0, 0, 1, 1], [], []>} : vector<4x4xf32>, vector<4x128xf32>, vector<4x128xf32> -> vector<4x128xf32>
    %c1_10 = arith.constant 1 : index
    %c0_11 = arith.constant 0 : index
    %c0_12 = arith.constant 0 : index
    %10 = vector.load %arg4[%c1_10, %c0_11, %c0_12] : memref<2x4x128xf32, #tpu.memory_space<vmem>>, vector<1x4x128xf32>
    %11 = vector.shape_cast %10 : vector<1x4x128xf32> to vector<4x128xf32>
    %12 = vector.shape_cast %9 : vector<4x128xf32> to vector<1x4x128xf32>
    tpu.vector_store %arg4[%c1_10, %c0_11, %c0_12], %12 {strides = array<i32>} : memref<2x4x128xf32, #tpu.memory_space<vmem>>, vector<1x4x128xf32>,
    return
  }
  func.func @transform_0(%arg0: i32, %arg1: i32) -> (i32, i32) {
    %c0_i32 = arith.constant 0 : i32
    %c0_i32_0 = arith.constant 0 : i32
    %c0_i32_1 = arith.constant 0 : i32
    return %c0_i32, %c0_i32_0 : i32, i32
  }
  func.func @transform_1(%arg0: i32, %arg1: i32) -> (i32, i32, i32) {
    %c0_i32 = arith.constant 0 : i32
    %c0_i32_0 = arith.constant 0 : i32
    return %arg0, %c0_i32, %arg1 : i32, i32, i32
  }
  func.func @transform_2(%arg0: i32, %arg1: i32) -> (i32, i32, i32) {
    %c0_i32 = arith.constant 0 : i32
    %c0_i32_0 = arith.constant 0 : i32
    return %arg0, %c0_i32, %arg1 : i32, i32, i32
  }
}

</mosaic_0001>

<bundles_post_ra>
// kernel: tpu_custom_call.1
= control target key start
LH: loop header
LB: loop body
LE: loop exit
PB: predicated region body
PF: predicated region fallthrough
CT: control target
= control target key end

     0   :  { %7 = vsyncpa [#allocation3], 0  ;;  %s925_s0 = inlined_call_operand.hbm [shape: f32[4,4], index: 0, kind: input, shape index: {}]   ;;  %s926_s1 = inlined_call_operand.hbm [shape: f32[2,4,256], index: 1, kind: input, shape index: {}]   ;;  %s927_s2 = inlined_call_operand.hbm [shape: f32[2,4,256], index: 2, kind: output, shape index: {}]  }
   0x1   :  { %8 = vsyncpa [#allocation6], 0 }
   0x2   :  { %10 = vsyncpa [#allocation6 + $0x1], 0 }
   0x3   :  { %11 = vsyncpa [#allocation4], 0 }
   0x4   :  { %13 = vsyncpa [#allocation4 + $0x1], 0  ;;  %s748_s9 = smov 0   ;;  %s750_s10 = smov 0  }
   0x5   :  { %s752_s11 = smov 0   ;;  %s754_s12 = smov 0  }
   0x6   :  { %s756_s13 = smov 0   ;;  %s758_s14 = smov 0  }
   0x7 LB: > { %s466_s15 = sadd.s32 4294967295, %s720_s14   ;;  %s467_s16 = sadd.s32 4294967294, %s720_s14   ;;  %s720_s14 = sphi %s758_s14, %s19_s14   ;;  %s716_s13 = sphi %s756_s13, %s946_s13   ;;  %s712_s12 = sphi %s754_s12, %s945_s12   ;;  %s708_s11 = sphi %s752_s11, %s944_s11   ;;  %s704_s10 = sphi %s750_s10, %s943_s10   ;;  %s700_s9 = sphi %s748_s9, %s942_s9  }
   0x8   : > { %s61_s17 = sadd.s32 1, %s708_s11  ;;  %p68_p0 = scmp.ne.s32.totalorder %s708_s11, %s704_s10 }
   0x9   : > { %p69_p1 = scmp.eq.s32.totalorder %s720_s14, 0  ;;  %p74_p2 = scmp.ne.s32.totalorder %s704_s10, %s700_s9 }
   0xa   : > { %p786_p3 = scmp.eq.s32.totalorder %s466_s15, 0  ;;  %p100_p4 = scmp.eq.s32.totalorder %s466_s15, 1 }
   0xb   : > { %p790_p5 = por %p69_p1, %p68_p0  ;;  %p106_p6 = scmp.eq.s32.totalorder %s467_s16, 1 }
   0xc   : > { %p796_p7 = por %p786_p3, %p74_p2  ;;  %p800_p8 = por %p100_p4, %p68_p0 }
   0xd   : > { %p804_p9 = por %p106_p6, %p74_p2  ;;  %p468_p10 = scmp.ge.s32.totalorder %s720_s14, 1 }
   0xe   : > { %s932_s20 = scalar_select %p796_p7, 1, 0 }
   0xf   : > { %s933_s21 = scalar_select %p800_p8, 1, 0 }
  0x10   : > { %s934_s22 = scalar_select %p804_p9, 1, 0 }
  0x11   : > { %p113_p11 = scmp.lt.s32.totalorder %s720_s14, 3  ;;  %s722_s24 = smov [#allocation2]  }
  0x12   : > { %s126_s25 = sshll.u32 %s722_s24, 4  ;;  %p522_p1 = scmp.lt.s32.totalorder %s720_s14, 2  ;;  %s127_s25 = int_to_ptr.vmem [resolvable:$true] %s126_s25 }
  0x13   : > { %p811_p13 = pnand %p468_p10, %p113_p11  ;;  %s28_s28 = sadd.s32 1, %s716_s13 }
  0x14   : > { %p820_p4 = pnand %p522_p1, %p790_p5  ;;  %p29_p6 = scmp.ge.s32.totalorder %s28_s28, 2 }
  0x15   : > { %p509_p0 = pneg %p811_p13  ;;  %s137_s29 = sand.u32 1, %s708_s11  }
  0x16   : > { %s593_s30 = scalar_lea.vmem %s127_s25, 64  ;;  %p601_p8 = scmp.lt.s32.totalorder %s127_s25, %s127_s25 }
  0x17   : > { %p826_p2 = pnand %p509_p0, %p786_p3  ;;  %p594_p11 = scmp.ne.s32.totalorder %s127_s25, %s593_s30 }
  0x18   : > { %p602_p5 = scmp.lt.s32.totalorder %s593_s30, %s593_s30 }
  0x19   : > { %p584_p10 = pneg %p826_p2 }
  0x1a   : > { %p603_p1 = por %p602_p5, %p601_p8 }
  0x1b   : > { %p596_p12 = pnand %p594_p11, %p584_p10 }
  0x1d   : > { %p597_p9 = pneg %p596_p12 }
  0x1f   : > { %p604_p7 = pnand %p603_p1, %p597_p9 }
  0x21   : > { %607 = shalt.err (!%p604_p7)
}
  0x22   : > { %512 = dma.hbm_to_vmem [thread:$0]  (!%p826_p2), %s925_s0, 64, %s127_s25, [#allocation3]  }
  0x23   : > { %s948_s28 = smov (%p29_p6, %s28_s28), 0  ;;  %s471_s5 = sshll.u32 %s137_s29, 3 }
  0x24   : > { %s57_s6 = ssub.s32 %s716_s13, %s948_s28  ;;  %s472_s7 = sshll.u32 %s716_s13, 6 }
  0x25   : > { %p59_p12 = scmp.eq.s32.totalorder %s57_s6, 0  ;;  %s149_s16 = scalar_lea.hbm %s926_s1, %s472_s7 }
  0x26   : > { %s141_s19 = scalar_lea.vmem [#allocation5], %s471_s5  ;;  %s138_s30 = scalar_lea.sflag [#allocation6], %s137_s29 }
  0x27   : > { %s150_s24 = sshll.u32 %s141_s19, 4  ;;  %p610_p7 = pneg %p820_p4  ;;  %s151_s24 = int_to_ptr.vmem [resolvable:$true] %s150_s24 }
  0x28   : > { %s850_s27 = scalar_select %p59_p12, %s708_s11, %s61_s17  }
  0x29   : > { %s621_s25 = scalar_lea.vmem %s151_s24, 128  ;;  %s723_s3 = smov [#allocation5]  }
  0x2a   : > { %p622_p8 = scmp.ne.s32.totalorder %s151_s24, %s621_s25  ;;  %s626_s4 = sshll.u32 %s723_s3, 4  ;;  %s627_s4 = int_to_ptr.vmem [resolvable:$false] %s626_s4 }
  0x2b   : > { %s628_s6 = scalar_lea.vmem %s627_s4, 256  ;;  %p629_p2 = scmp.lt.s32.totalorder %s151_s24, %s627_s4 }
  0x2c   : > { %p624_p9 = pnand %p622_p8, %p610_p7  ;;  %p630_p6 = scmp.lt.s32.totalorder %s628_s6, %s621_s25 }
  0x2e   : > { %p625_p0 = pneg %p624_p9  ;;  %p631_p10 = por %p630_p6, %p629_p2 }
  0x30   : > { %p632_p11 = pnand %p631_p10, %p625_p0 }
  0x32   : > { %635 = shalt.err (!%p632_p11)
}
  0x33   : > { %s724_s5 = smov 128   ;;  %s725_s17 = smov 64  }
  0x34   : > { %s726_s7 = smov 4   ;;  %162 = sbr.rel (%p811_p13) target bundleno = 275 (0x113), region = 28 }
  0x35   : > { %516 = dma.hbm_to_vmem [thread:$0]  (!%p820_p4), %s149_s16, 128, %s151_s24, %s138_s30, %s724_s5, %s725_s17, %s726_s7  }
  0x39   : > { %687 = dma.done.wait (%p786_p3), [#allocation3], 64  }
  0x3a   : > { %689 = vsyncadd (%p786_p3), [#allocation3], 4294967232  ;;  %s863_s29 = sand.u32 1, %s704_s10   ;;  %p938_p5 = scmp.ne.s32.totalorder %s932_s20, 0 }
  0x3b   : > { %s475_s8 = sshll.u32 %s863_s29, 3  ;;  %s169_s15 = scalar_lea.sflag [#allocation6], %s863_s29 }
  0x3c   : > { %s172_s19 = scalar_lea.vmem [#allocation5], %s475_s8 }
  0x3d   : > { %691 = dma.done.wait (%p938_p5), %s169_s15, 128  }
  0x3e   : > { %693 = vsyncadd (%p938_p5), %s169_s15, 4294967168  ;;  %v727_v0 = vmov 0.0   ;;  %vm728_vm0 = vmmov 0   ;;  %vm201_vm1 = vcmask 1043456   ;;  %vm197_vm2 = vcmask 31744   ;;  %s192_s18 = scalar_lea.vmem [#allocation7], %s475_s8 }
  0x3f   : > { %491 = vmatprep.subr.mxu0 %v727_v0  ;;  %496 = vmatprep.subr.mxu1 %v727_v0  ;;  %v196_v1 = vld [vmem:[%s172_s19] sm:$0xf]  ;;  %v479_v2 = vld [vmem:[%s172_s19 + $0x4] sm:$0xf]  ;;  %v195_v3 = vld [vmem:[#allocation2] sm:$0xf] }
  0x40   : > { %493 = vmatprep.mubr.msk.f32.mxu0 %vm728_vm0, %v727_v0  ;;  %498 = vmatprep.mubr.msk.f32.mxu1 %vm728_vm0, %v727_v0  ;;  %s369_s20 = sshll.u32 %s192_s18, 4  ;;  %s484_s23 = sshll.u32 %s712_s12, 6  ;;  %s872_s20 = int_to_ptr.vmem [resolvable:$true] %s369_s20 }
  0x41   : > { %492 = vmatpush3.msk.msra.mxu0 %vm201_vm1, %v196_v1  ;;  %497 = vmatpush3.msk.msra.mxu1 %vm201_vm1, %v479_v2  ;;  %s877_s24 = scalar_lea.hbm %s927_s2, %s484_s23  ;;  %s354_s30 = scalar_lea.sflag [#allocation4], %s863_s29 }
  0x42   : > { %494 = vmatmul.mubr.msk.f32.vlgmr.msra.gmra.mxu0 %vm197_vm2, %v195_v3  ;;  %499 = vmatmul.mubr.msk.f32.vlgmr.msra.gmra.mxu1 %vm197_vm2, %v195_v3  ;;  %s636_s25 = scalar_lea.vmem %s872_s20, 128  ;;  %p939_p13 = scmp.ne.s32.totalorder %s933_s21, 0 }
  0x43   : > { %p637_p3 = scmp.ne.s32.totalorder %s872_s20, %s636_s25  ;;  %s729_s12 = smov [#allocation7]  }
  0x44   : > { %s640_s3 = sshll.u32 %s729_s12, 4  ;;  %s641_s3 = int_to_ptr.vmem [resolvable:$false] %s640_s3 }
  0x45   : > { %p638_p4 = pnand %p637_p3, %p939_p13  ;;  %s642_s4 = scalar_lea.vmem %s641_s3, 256 }
  0x46   : > { %p643_p12 = scmp.lt.s32.totalorder %s872_s20, %s641_s3  ;;  %p644_p7 = scmp.lt.s32.totalorder %s642_s4, %s636_s25 }
  0x47   : > { %p639_p1 = pneg %p638_p4 }
  0x48   : > { %p645_p8 = por %p644_p7, %p643_p12 }
  0x4a   : > { %p646_p9 = pnand %p645_p8, %p639_p1 }
 0x102   : > { %v271_v4 = vpop.f32.mrf.mxu0  ;;  %v347_v5 = vpop.f32.mrf.mxu1 }
 0x103   : > { %275 = vst [vmem:[%s192_s18] sm:$0xf] %v271_v4  ;;  %482 = vst [vmem:[%s192_s18 + $0x4] sm:$0xf] %v347_v5 }
 0x104   : > { %v495_v6 = vpop.f32.mrf.mxu0  ;;  %v500_v7 = vpop.f32.mrf.mxu1 }
 0x105   : > { %649 = shalt.err (!%p646_p9)
}
 0x106   : > { %s650_s6 = scalar_lea.hbm %s877_s24, 128  ;;  %s654_s7 = scalar_lea.hbm %s927_s2, 256 }
 0x107   : > { %p651_p0 = scmp.ne.s32.totalorder %s877_s24, %s650_s6  ;;  %p655_p10 = scmp.lt.s32.totalorder %s877_s24, %s927_s2 }
 0x108   : > { %p656_p11 = scmp.lt.s32.totalorder %s654_s7, %s650_s6 }
 0x109   : > { %p652_p2 = pnand %p651_p0, %p939_p13 }
 0x10a   : > { %p657_p5 = por %p656_p11, %p655_p10 }
 0x10b   : > { %p653_p6 = pneg %p652_p2 }
 0x10d   : > { %p658_p3 = pnand %p657_p5, %p653_p6 }
 0x10f   : > { %661 = shalt.err (!%p658_p3)
}
 0x110   : > { %s730_s19 = smov 64   ;;  %s731_s18 = smov 128  }
 0x111   : > { %s732_s23 = smov 4  }
 0x112   : > { %507 = dma.vmem_to_hbm [thread:$0]  (%p939_p13), %s872_s20, 128, %s877_s24, %s354_s30, %s730_s19, %s731_s18, %s732_s23  }
 0x113 PF: > { %s384_s26 = sand.u32 1, %s700_s9   ;;  %p940_p4 = scmp.ne.s32.totalorder %s934_s22, 0 }
 0x114   : > { %p941_p1 = scmp.ge.s32.totalorder %s720_s14, 2  ;;  %s385_s16 = scalar_lea.sflag [#allocation4], %s384_s26 }
 0x116   : > { %p518_p12 = pnand %p941_p1, %p940_p4 }
 0x118   : > { %p519_p7 = pneg %p518_p12 }
 0x11a   : > { %695 = dma.done.wait (%p519_p7), %s385_s16, 128  }
 0x11b   : > { %697 = vsyncadd (%p519_p7), %s385_s16, 4294967168  ;;  %s19_s14 = sadd.s32 1, %s720_s14   ;;  %s942_s9 = smov %s704_s10 }
 0x11c   : > { %p16_p8 = scmp.ge.s32.totalorder %s19_s14, 4   ;;  %s943_s10 = smov %s708_s11 }
 0x11d   : > { %s944_s11 = smov %s850_s27  ;;  %s945_s12 = smov %s716_s13 }
 0x11e   : > { %s946_s13 = smov %s948_s28  ;;  %18 = sbr.rel (!%p16_p8) target bundleno = 7 (0x7), region = 80 }
 0x123   :  { %390 = vsyncpa [#allocation3], 1 }
 0x124   :  { %392 = vsyncpa [#allocation3 + $0x1], 1 }
 0x125   :  { %393 = vsyncpa [#allocation6], 1 }
 0x126   :  { %395 = vsyncpa [#allocation6 + $0x1], 1 }
 0x127   :  { %396 = vsyncpa [#allocation4], 1 }
 0x128   :  { %398 = vsyncpa [#allocation4 + $0x1], 1 }

</bundles_post_ra>
